<compile_context>
chip_gen: v5e
topology: v5e:2x2
jax: 0.10.0
libtpu: 0.0.40
codegen_flags: <defaults>
</compile_context>

<pallas_src>
import functools

import jax
import jax.numpy as jnp
from jax.experimental import pallas as pl
from jax.experimental.pallas import tpu as pltpu


def _round_up(x, m):
    return ((x + m - 1) // m) * m


@functools.lru_cache(maxsize=1)
def _vmem_budget_bytes():
    """~80% of this generation's physical VMEM (v5e/v6e 128 MiB, v7x 64 MiB)."""
    try:
        cap = int(pltpu.get_tpu_info().vmem_capacity_bytes)
    except Exception:
        cap = 64 * 1024 * 1024          # conservative fallback (v7x-sized)
    return int(cap * 0.8)


def policy_kernel(states_ref, w1_ref, b1_ref, w2_ref, b2_ref,
                  emb_t_ref, emb_b_ref, out_ref, h2_ref):
    # Grid: (batch tile i [parallel], class tile j [arbitrary]).
    # states_ref : (TB, in_p)  bf16
    # w1_ref     : (in_p, l1_p) bf16    b1_ref    : (1, l1_p) f32
    # w2_ref     : (l1_p, e_p)  bf16    b2_ref    : (1, e_p)  f32
    # emb_t_ref  : (e_p, TC)    bf16    emb_b_ref : (1, TC)   f32
    # out_ref    : (TB, TC)     bf16    h2_ref    : (TB, e_p) bf16 scratch

    # h2 depends only on the batch tile; the inner class axis restarts at
    # j == 0 for every new batch tile, so compute it once and keep it in a
    # VMEM scratch that persists across the class sweep.
    @pl.when(pl.program_id(1) == 0)
    def _():
        h1 = jnp.dot(states_ref[...], w1_ref[...],
                     preferred_element_type=jnp.float32)       # MXU, f32 acc
        h1 = jnp.maximum(h1 + b1_ref[...], 0.0)                # f32 VPU
        h2 = jnp.dot(h1.astype(jnp.bfloat16), w2_ref[...],
                     preferred_element_type=jnp.float32)       # MXU
        h2 = jnp.maximum(h2 + b2_ref[...], 0.0)
        h2_ref[...] = h2.astype(jnp.bfloat16)

    # Scores over this class tile:  h2 @ class_embed.T[:, tile] + bias_row.
    scores = jnp.dot(h2_ref[...], emb_t_ref[...],
                     preferred_element_type=jnp.float32)
    out_ref[...] = (scores + emb_b_ref[...]).astype(out_ref.dtype)


def prepare_padded_params(params, block_c=2048):
    """One-time prep: pad weights / transpose the class table to MXU shapes.

    Hoisted out of the per-call path so the forward pass never re-materializes
    or re-transposes the (n_class, E) table.
    """
    ce = params["class_embed"]            # (n_class, E) f32
    ceb = params["class_embed_bias"]      # (n_class, 1) f32
    w1, b1 = params["w1"], params["b1"]   # (in_dim, L1), (1, L1)
    w2, b2 = params["w2"], params["b2"]   # (L1, E),     (1, E)

    n_class, E = ce.shape
    in_dim, L1 = w1.shape

    in_p = _round_up(in_dim, 128)
    l1_p = _round_up(L1, 128)
    e_p = _round_up(E, 128)
    c_p = _round_up(n_class, 128)
    if c_p > block_c:                      # make the class tile divide c_p
        c_p = _round_up(c_p, block_c)

    bf16, f32 = jnp.bfloat16, jnp.float32
    return {
        "class_embed": ce,                 # unpadded f32, for the cur-class gather
        "w1_p": jnp.zeros((in_p, l1_p), bf16).at[:in_dim, :L1].set(w1.astype(bf16)),
        "b1_p": jnp.zeros((1, l1_p), f32).at[:, :L1].set(b1.astype(f32)),
        "w2_p": jnp.zeros((l1_p, e_p), bf16).at[:L1, :E].set(w2.astype(bf16)),
        "b2_p": jnp.zeros((1, e_p), f32).at[:, :E].set(b2.astype(f32)),
        "emb_t_p": jnp.zeros((e_p, c_p), bf16).at[:E, :n_class].set(ce.T.astype(bf16)),
        "emb_b_p": jnp.zeros((1, c_p), f32).at[0, :n_class].set(ceb[:, 0].astype(f32)),
    }


@functools.partial(jax.jit, static_argnames=("block_b", "block_c"))
def policy_forward(prep, bag_vec, cur_class_batch, next_classes_batch,
                   block_b=256, block_c=2048):
    """Embedding gather + concat in JAX; MLP + tiled full-table scoring in Pallas."""
    ce = prep["class_embed"]
    w1_p, b1_p = prep["w1_p"], prep["b1_p"]
    w2_p, b2_p = prep["w2_p"], prep["b2_p"]
    emb_t_p, emb_b_p = prep["emb_t_p"], prep["emb_b_p"]

    n_class, E = ce.shape
    B, H3 = bag_vec.shape
    in_dim = H3 + E
    in_p, l1_p = w1_p.shape
    _, e_p = w2_p.shape
    _, c_p = emb_t_p.shape

    # ---- tile sizes ---------------------------------------------------------
    # 16-row alignment: bf16 packs 2 rows per sublane; 256 rows fill the
    # 256x256 MXU on v6e/v7x (no harm on v5e's 128x128).
    tb = min(block_b, _round_up(B, 16))
    b_p = _round_up(B, tb)
    tc = c_p if c_p <= block_c else block_c
    assert c_p % tc == 0, "use the same block_c for prepare_padded_params()"

    bf16 = jnp.bfloat16

    # ---- per-call glue: current-class gather + concat + batch padding ------
    cur_emb = jnp.take(ce, cur_class_batch, axis=0)              # (B, E)
    states = jnp.concatenate([bag_vec, cur_emb], axis=1).astype(bf16)
    states_p = jnp.zeros((b_p, in_p), bf16).at[:B, :in_dim].set(states)

    grid = (b_p // tb, c_p // tc)

    # ---- advisory cost estimate (helps XLA overlap the gathers) ------------
    flops = 2 * b_p * (in_p * l1_p + l1_p * e_p + e_p * c_p)
    bytes_accessed = (
        states_p.size * 2 + w1_p.size * 2 + w2_p.size * 2 + emb_t_p.size * 2
        + b1_p.size * 4 + b2_p.size * 4 + emb_b_p.size * 4
        + b_p * c_p * 2)
    cost = pl.CostEstimate(flops=flops, transcendentals=0,
                           bytes_accessed=bytes_accessed)

    # ---- VMEM budget: double-buffered tiles + resident weights + scratch ---
    per_step_bytes = (
        2 * (tb * in_p * 2)                        # states tile (bf16)
        + 2 * (e_p * tc * 2 + tc * 4)              # emb_t / emb_b tiles
        + 2 * (tb * tc * 2)                        # output tile (bf16)
        + 2 * (in_p * l1_p * 2 + l1_p * 4          # resident MLP weights/biases
               + l1_p * e_p * 2 + e_p * 4)
        + tb * e_p * 2                             # h2 scratch (bf16)
        + tb * max(l1_p, tc) * 4)                  # f32 intermediates
    vmem_limit = int(min(_vmem_budget_bytes(),
                         max(2 * per_step_bytes, 32 * 1024 * 1024)))

    scores_all = pl.pallas_call(
        policy_kernel,
        out_shape=jax.ShapeDtypeStruct((b_p, c_p), bf16),
        grid=grid,
        in_specs=[
            pl.BlockSpec((tb, in_p), lambda i, j: (i, 0)),
            pl.BlockSpec((in_p, l1_p), lambda i, j: (0, 0)),
            pl.BlockSpec((1, l1_p), lambda i, j: (0, 0)),
            pl.BlockSpec((l1_p, e_p), lambda i, j: (0, 0)),
            pl.BlockSpec((1, e_p), lambda i, j: (0, 0)),
            pl.BlockSpec((e_p, tc), lambda i, j: (0, j)),
            pl.BlockSpec((1, tc), lambda i, j: (0, j)),
        ],
        out_specs=pl.BlockSpec((tb, tc), lambda i, j: (i, j)),
        scratch_shapes=[pltpu.VMEM((tb, e_p), bf16)],
        compiler_params=pltpu.CompilerParams(
            dimension_semantics=("parallel", "arbitrary"),
            vmem_limit_bytes=vmem_limit,
        ),
        cost_estimate=cost,
    )(states_p, w1_p, b1_p, w2_p, b2_p, emb_t_p, emb_b_p)

    # ---- gather the N candidate columns (JAX glue) -------------------------
    # TODO(synk): fusing the per-example candidate gather into the kernel would
    # avoid the (B, c_p) writeback entirely but needs an in-kernel data-
    # dependent column gather; bf16 output halves the writeback instead.
    probs = jnp.take_along_axis(scores_all[:B], next_classes_batch, axis=1)
    return probs.astype(jnp.float32)


def init_params(key, n_class, class_embed_size, hidden_size, l1_size):
    """Deterministic parameter init matching the PyTorch module's shapes."""
    E = class_embed_size
    in_dim = E + hidden_size * 3
    k = jax.random.split(key, 6)

    stdv = 1.0 / jnp.sqrt(jnp.float32(E))
    class_embed = jax.random.uniform(k[0], (n_class, E), jnp.float32, -stdv, stdv)
    class_embed_bias = jax.random.uniform(k[1], (n_class, 1), jnp.float32, -stdv, stdv)

    s1 = 1.0 / jnp.sqrt(jnp.float32(in_dim))
    w1 = jax.random.uniform(k[2], (in_dim, l1_size), jnp.float32, -s1, s1)
    b1 = jax.random.uniform(k[3], (1, l1_size), jnp.float32, -s1, s1)

    s2 = 1.0 / jnp.sqrt(jnp.float32(l1_size))
    w2 = jax.random.uniform(k[4], (l1_size, E), jnp.float32, -s2, s2)
    b2 = jax.random.uniform(k[5], (1, E), jnp.float32, -s2, s2)

    return {
        "class_embed": class_embed,
        "class_embed_bias": class_embed_bias,
        "w1": w1, "b1": b1,
        "w2": w2, "b2": b2,
    }


def reference_forward_f32(params, bag_vec, cur_class_batch, next_classes_batch):
    """Pure-f32 JAX reference mirroring the original PyTorch forward."""
    cur = params["class_embed"][cur_class_batch]
    nxt = params["class_embed"][next_classes_batch]
    nb = params["class_embed_bias"][next_classes_batch][..., 0]
    states = jnp.concatenate([bag_vec, cur], axis=1)
    h1 = jax.nn.relu(states @ params["w1"] + params["b1"])
    h2 = jax.nn.relu(h1 @ params["w2"] + params["b2"])
    return jnp.einsum("bne,be->bn", nxt, h2) + nb


def reference_forward_mixed(params, bag_vec, cur_class_batch, next_classes_batch):
    """Mixed-precision reference matching the kernel's bf16-matmul/f32-acc path."""
    bf16 = jnp.bfloat16
    ce = params["class_embed"]
    cur = ce[cur_class_batch]
    states = jnp.concatenate([bag_vec, cur], axis=1).astype(bf16)
    h1 = jnp.maximum(
        jnp.dot(states, params["w1"].astype(bf16),
                preferred_element_type=jnp.float32) + params["b1"], 0.0)
    h2 = jnp.maximum(
        jnp.dot(h1.astype(bf16), params["w2"].astype(bf16),
                preferred_element_type=jnp.float32) + params["b2"], 0.0)
    scores = (jnp.dot(h2.astype(bf16), ce.T.astype(bf16),
                      preferred_element_type=jnp.float32)
              + params["class_embed_bias"][:, 0][None, :])
    return jnp.take_along_axis(scores, next_classes_batch, axis=1)


if __name__ == "__main__":
    # Small config: class_embed_size=32, hidden_size=32 -> in_dim=128, l1_size=64
    n_class = 20
    class_embed_size = 32
    hidden_size = 32
    l1_size = 64
    B = 8     # batch
    N = 16    # candidate next classes per example

    key = jax.random.PRNGKey(0)
    kp, kb, kc, kn = jax.random.split(key, 4)

    params = init_params(kp, n_class, class_embed_size, hidden_size, l1_size)
    prep = prepare_padded_params(params)          # one-time padded/transposed weights

    bag_vec = jax.random.normal(kb, (B, hidden_size * 3), jnp.float32)
    cur_class_batch = jax.random.randint(kc, (B,), 0, n_class, jnp.int32)
    next_classes_batch = jax.random.randint(kn, (B, N), 0, n_class, jnp.int32)

    probs = policy_forward(prep, bag_vec, cur_class_batch, next_classes_batch)
    jax.block_until_ready(probs)
    assert probs.shape == (B, N)

    # Check against a reference that uses the same bf16-matmul/f32-acc path
    # (kernel output is additionally rounded to bf16 on store).
    ref_mixed = reference_forward_mixed(params, bag_vec, cur_class_batch,
                                        next_classes_batch)
    assert jnp.allclose(probs, ref_mixed, atol=1e-2, rtol=1e-2)

    # Loose check against the original full-f32 semantics.
    ref_f32 = reference_forward_f32(params, bag_vec, cur_class_batch,
                                    next_classes_batch)
    assert jnp.allclose(probs, ref_f32, atol=5e-2, rtol=5e-2)

    print("KERNEL_OK")
</pallas_src>

<mosaic_0001>
module attributes {stable_mosaic.version = 11 : i64} {
  func.func @policy_kernel(%arg0: i32, %arg1: i32, %arg2: memref<16x128xbf16, #tpu.memory_space<vmem>>, %arg3: memref<128x128xbf16, #tpu.memory_space<vmem>>, %arg4: memref<1x128xf32, #tpu.memory_space<vmem>>, %arg5: memref<128x128xbf16, #tpu.memory_space<vmem>>, %arg6: memref<1x128xf32, #tpu.memory_space<vmem>>, %arg7: memref<128x128xbf16, #tpu.memory_space<vmem>>, %arg8: memref<1x128xf32, #tpu.memory_space<vmem>>, %arg9: memref<16x128xbf16, #tpu.memory_space<vmem>>, %arg10: memref<16x128xbf16, #tpu.memory_space<vmem>>) attributes {dimension_semantics = [#tpu.dimension_semantics<parallel>, #tpu.dimension_semantics<arbitrary>], iteration_bounds = array<i64: 1, 1>, scalar_prefetch = 0 : i64, scratch_operands = 1 : i64, tpu.core_type = #tpu.core_type<tc>, window_params = [{transform_indices = @transform_0, window_bounds = array<i64: 16, 128>}, {pipeline_mode = #tpu.pipeline_mode<synchronous>, transform_indices = @transform_1, window_bounds = array<i64: 128, 128>}, {pipeline_mode = #tpu.pipeline_mode<synchronous>, transform_indices = @transform_2, window_bounds = array<i64: 1, 128>}, {pipeline_mode = #tpu.pipeline_mode<synchronous>, transform_indices = @transform_3, window_bounds = array<i64: 128, 128>}, {pipeline_mode = #tpu.pipeline_mode<synchronous>, transform_indices = @transform_4, window_bounds = array<i64: 1, 128>}, {transform_indices = @transform_5, window_bounds = array<i64: 128, 128>}, {transform_indices = @transform_6, window_bounds = array<i64: 1, 128>}, {transform_indices = @transform_7, window_bounds = array<i64: 16, 128>}]} {
    %c0_i32 = arith.constant 0 : i32
    %0 = arith.cmpi eq, %arg1, %c0_i32 : i32
    %1 = arith.extui %0 : i1 to i32
    %c0_i32_0 = arith.constant 0 : i32
    %2 = arith.cmpi ne, %1, %c0_i32_0 : i32
    scf.if %2 {
      %c0_8 = arith.constant 0 : index
      %c0_9 = arith.constant 0 : index
      %11 = vector.load %arg2[%c0_8, %c0_9] : memref<16x128xbf16, #tpu.memory_space<vmem>>, vector<16x128xbf16>
      %c0_10 = arith.constant 0 : index
      %c0_11 = arith.constant 0 : index
      %12 = vector.load %arg3[%c0_10, %c0_11] : memref<128x128xbf16, #tpu.memory_space<vmem>>, vector<128x128xbf16>
      %cst_12 = arith.constant dense<0.000000e+00> : vector<16x128xf32>
      %13 = tpu.matmul %11, %12, %cst_12 {dimension_numbers = #tpu.dot_dimension_numbers<[1], [0], [0], [1], [0, 0, 1, 1], [], []>} : vector<16x128xbf16>, vector<128x128xbf16>, vector<16x128xf32> -> vector<16x128xf32>
      %c0_13 = arith.constant 0 : index
      %c0_14 = arith.constant 0 : index
      %14 = vector.load %arg4[%c0_13, %c0_14] : memref<1x128xf32, #tpu.memory_space<vmem>>, vector<1x128xf32>
      %15 = vector.broadcast %14 : vector<1x128xf32> to vector<16x128xf32>
      %16 = arith.addf %13, %15 : vector<16x128xf32>
      %cst_15 = arith.constant 0.000000e+00 : f32
      %17 = vector.broadcast %cst_15 : f32 to vector<16x128xf32>
      %18 = arith.maximumf %16, %17 : vector<16x128xf32>
      %19 = arith.truncf %18 : vector<16x128xf32> to vector<16x128xbf16>
      %c0_16 = arith.constant 0 : index
      %c0_17 = arith.constant 0 : index
      %20 = vector.load %arg5[%c0_16, %c0_17] : memref<128x128xbf16, #tpu.memory_space<vmem>>, vector<128x128xbf16>
      %cst_18 = arith.constant dense<0.000000e+00> : vector<16x128xf32>
      %21 = tpu.matmul %19, %20, %cst_18 {dimension_numbers = #tpu.dot_dimension_numbers<[1], [0], [0], [1], [0, 0, 1, 1], [], []>} : vector<16x128xbf16>, vector<128x128xbf16>, vector<16x128xf32> -> vector<16x128xf32>
      %c0_19 = arith.constant 0 : index
      %c0_20 = arith.constant 0 : index
      %22 = vector.load %arg6[%c0_19, %c0_20] : memref<1x128xf32, #tpu.memory_space<vmem>>, vector<1x128xf32>
      %23 = vector.broadcast %22 : vector<1x128xf32> to vector<16x128xf32>
      %24 = arith.addf %21, %23 : vector<16x128xf32>
      %cst_21 = arith.constant 0.000000e+00 : f32
      %25 = vector.broadcast %cst_21 : f32 to vector<16x128xf32>
      %26 = arith.maximumf %24, %25 : vector<16x128xf32>
      %27 = arith.truncf %26 : vector<16x128xf32> to vector<16x128xbf16>
      %c0_22 = arith.constant 0 : index
      %c0_23 = arith.constant 0 : index
      %28 = vector.load %arg10[%c0_22, %c0_23] : memref<16x128xbf16, #tpu.memory_space<vmem>>, vector<16x128xbf16>
      tpu.vector_store %arg10[%c0_22, %c0_23], %27 {strides = array<i32>} : memref<16x128xbf16, #tpu.memory_space<vmem>>, vector<16x128xbf16>,
    } else {
    }
    %c0 = arith.constant 0 : index
    %c0_1 = arith.constant 0 : index
    %3 = vector.load %arg10[%c0, %c0_1] : memref<16x128xbf16, #tpu.memory_space<vmem>>, vector<16x128xbf16>
    %c0_2 = arith.constant 0 : index
    %c0_3 = arith.constant 0 : index
    %4 = vector.load %arg7[%c0_2, %c0_3] : memref<128x128xbf16, #tpu.memory_space<vmem>>, vector<128x128xbf16>
    %cst = arith.constant dense<0.000000e+00> : vector<16x128xf32>
    %5 = tpu.matmul %3, %4, %cst {dimension_numbers = #tpu.dot_dimension_numbers<[1], [0], [0], [1], [0, 0, 1, 1], [], []>} : vector<16x128xbf16>, vector<128x128xbf16>, vector<16x128xf32> -> vector<16x128xf32>
    %c0_4 = arith.constant 0 : index
    %c0_5 = arith.constant 0 : index
    %6 = vector.load %arg8[%c0_4, %c0_5] : memref<1x128xf32, #tpu.memory_space<vmem>>, vector<1x128xf32>
    %7 = vector.broadcast %6 : vector<1x128xf32> to vector<16x128xf32>
    %8 = arith.addf %5, %7 : vector<16x128xf32>
    %9 = arith.truncf %8 : vector<16x128xf32> to vector<16x128xbf16>
    %c0_6 = arith.constant 0 : index
    %c0_7 = arith.constant 0 : index
    %10 = vector.load %arg9[%c0_6, %c0_7] : memref<16x128xbf16, #tpu.memory_space<vmem>>, vector<16x128xbf16>
    tpu.vector_store %arg9[%c0_6, %c0_7], %9 {strides = array<i32>} : memref<16x128xbf16, #tpu.memory_space<vmem>>, vector<16x128xbf16>,
    return
  }
  func.func @transform_0(%arg0: i32, %arg1: i32) -> (i32, i32) {
    %c0_i32 = arith.constant 0 : i32
    %c0_i32_0 = arith.constant 0 : i32
    return %arg0, %c0_i32 : i32, i32
  }
  func.func @transform_1(%arg0: i32, %arg1: i32) -> (i32, i32) {
    %c0_i32 = arith.constant 0 : i32
    %c0_i32_0 = arith.constant 0 : i32
    %c0_i32_1 = arith.constant 0 : i32
    return %c0_i32, %c0_i32_0 : i32, i32
  }
  func.func @transform_2(%arg0: i32, %arg1: i32) -> (i32, i32) {
    %c0_i32 = arith.constant 0 : i32
    %c0_i32_0 = arith.constant 0 : i32
    %c0_i32_1 = arith.constant 0 : i32
    return %c0_i32, %c0_i32_0 : i32, i32
  }
  func.func @transform_3(%arg0: i32, %arg1: i32) -> (i32, i32) {
    %c0_i32 = arith.constant 0 : i32
    %c0_i32_0 = arith.constant 0 : i32
    %c0_i32_1 = arith.constant 0 : i32
    return %c0_i32, %c0_i32_0 : i32, i32
  }
  func.func @transform_4(%arg0: i32, %arg1: i32) -> (i32, i32) {
    %c0_i32 = arith.constant 0 : i32
    %c0_i32_0 = arith.constant 0 : i32
    %c0_i32_1 = arith.constant 0 : i32
    return %c0_i32, %c0_i32_0 : i32, i32
  }
  func.func @transform_5(%arg0: i32, %arg1: i32) -> (i32, i32) {
    %c0_i32 = arith.constant 0 : i32
    %c0_i32_0 = arith.constant 0 : i32
    return %c0_i32, %arg1 : i32, i32
  }
  func.func @transform_6(%arg0: i32, %arg1: i32) -> (i32, i32) {
    %c0_i32 = arith.constant 0 : i32
    %c0_i32_0 = arith.constant 0 : i32
    return %c0_i32, %arg1 : i32, i32
  }
  func.func @transform_7(%arg0: i32, %arg1: i32) -> (i32, i32) {
    %c0_i32 = arith.constant 0 : i32
    return %arg0, %arg1 : i32, i32
  }
}

</mosaic_0001>

<bundles_post_ra>
// kernel: policy_forward.1
= control target key start
LH: loop header
LB: loop body
LE: loop exit
PB: predicated region body
PF: predicated region fallthrough
CT: control target
= control target key end

     0   :  { %12 = vsyncpa [#allocation4], 0  ;;  %s631_s0 = inlined_call_operand.vmem [shape: bf16[16,128], index: 0, kind: input, shape index: {}]   ;;  %s632_s1 = inlined_call_operand.vmem [shape: bf16[128,128], index: 1, kind: input, shape index: {}]   ;;  %s633_s2 = inlined_call_operand.vmem [shape: f32[1,128], index: 2, kind: input, shape index: {}]   ;;  %s634_s3 = inlined_call_operand.hbm [shape: bf16[128,128], index: 3, kind: input, shape index: {}]   ;;  %s635_s4 = inlined_call_operand.vmem [shape: f32[1,128], index: 4, kind: input, shape index: {}]   ;;  %s636_s5 = inlined_call_operand.hbm [shape: bf16[128,128], index: 5, kind: input, shape index: {}]   ;;  %s637_s6 = inlined_call_operand.vmem [shape: f32[1,128], index: 6, kind: input, shape index: {}]   ;;  %s638_s7 = inlined_call_operand.vmem [shape: bf16[16,128], index: 7, kind: output, shape index: {}]  }
   0x1   :  { %s24_s26 = sshll.u32 %s634_s3, 4  ;;  %s25_s26 = int_to_ptr.hbm [resolvable:$true] %s24_s26 }
   0x2   :  { %13 = vsyncpa [#allocation6], 0  ;;  %s542_s27 = smov [#allocation3]   ;;  %s39_s8 = sshll.u32 %s636_s5, 4  ;;  %s40_s8 = int_to_ptr.hbm [resolvable:$true] %s39_s8 }
   0x3   :  { %s26_s28 = sshll.u32 %s542_s27, 4  ;;  %s543_s9 = smov 64   ;;  %s27_s28 = int_to_ptr.vmem [resolvable:$true] %s26_s28 }
   0x4   :  { %s544_s10 = smov 4   ;;  %s545_s11 = smov [#allocation5]  }
   0x5   :  { %32 = dma.hbm_to_vmem [thread:$0]  %s25_s26, 1024, %s27_s28, [#allocation4], %s543_s9, %s543_s9, %s544_s10  }
   0x6   :  { %s41_s12 = sshll.u32 %s545_s11, 4  ;;  %s42_s12 = int_to_ptr.vmem [resolvable:$true] %s41_s12 }
   0x7   :  { %47 = dma.hbm_to_vmem [thread:$0]  %s40_s8, 1024, %s42_s12, [#allocation6], %s543_s9, %s543_s9, %s544_s10  }
   0x8   :  { %538 = dma.done.wait [#allocation4], 1024  }
   0x9   :  { %539 = vsyncadd [#allocation4], 4294966272 }
   0xa   :  { %540 = dma.done.wait [#allocation6], 1024  }
   0xb   :  { %541 = vsyncadd [#allocation6], 4294966272  ;;  %v455_v0 = vld [vmem:[%s632_s1 + $0x38] sm:$0xff]  ;;  %v454_v1 = vld [vmem:[%s632_s1 + $0x30] sm:$0xff] }
   0xc   :  { %138 = vmatpush.bf16.msra.mxu0 %v455_v0  ;;  %v463_v2 = vld [vmem:[#allocation3 + $0x38] sm:$0xff]  ;;  %v462_v3 = vld [vmem:[#allocation3 + $0x30] sm:$0xff]  ;;  %v453_v4 = vld [vmem:[%s632_s1 + $0x28] sm:$0xff] }
   0xd   :  { %223 = vmatpush.bf16.msra.mxu1 %v463_v2  ;;  %v461_v5 = vld [vmem:[#allocation3 + $0x28] sm:$0xff]  ;;  %v452_v6 = vld [vmem:[%s632_s1 + $0x20] sm:$0xff]  ;;  %v460_v7 = vld [vmem:[#allocation3 + $0x20] sm:$0xff] }
   0xe   :  { %v451_v8 = vld [vmem:[%s632_s1 + $0x18] sm:$0xff]  ;;  %v450_v9 = vld [vmem:[%s632_s1 + $0x10] sm:$0xff]  ;;  %v449_v10 = vld [vmem:[%s632_s1 + $0x8] sm:$0xff] }
   0xf   :  { %v448_v11 = vld [vmem:[%s632_s1] sm:$0xff]  ;;  %v458_v14 = vld [vmem:[#allocation3 + $0x10] sm:$0xff]  ;;  %v457_v15 = vld [vmem:[#allocation3 + $0x8] sm:$0xff] }
  0x10   :  { %139 = vmatpush.bf16.msra.mxu0 %v454_v1  ;;  %v447_v12 = vld [vmem:[%s631_s0] sm:$0xff]  ;;  %v456_v16 = vld [vmem:[#allocation3] sm:$0xff]  ;;  %v471_v18 = vld [vmem:[#allocation5 + $0x30] sm:$0xff] }
  0x11   :  { %224 = vmatpush.bf16.msra.mxu1 %v462_v3  ;;  %v459_v13 = vld [vmem:[#allocation3 + $0x18] sm:$0xff]  ;;  %v470_v27 = vld [vmem:[#allocation5 + $0x28] sm:$0xff]  ;;  %v469_v28 = vld [vmem:[#allocation5 + $0x20] sm:$0xff] }
  0x12   :  { %v472_v17 = vld [vmem:[#allocation5 + $0x38] sm:$0xff]  ;;  %v467_v30 = vld [vmem:[#allocation5 + $0x10] sm:$0xff]  ;;  %v466_v31 = vld [vmem:[#allocation5 + $0x8] sm:$0xff] }
  0x13   :  { %319 = vmatpush.bf16.msra.mxu2 %v472_v17  ;;  %v487_v20 = vld [vmem:[%s633_s2] ss:$0 sm:$0xff]  ;;  %v465_v32 = vld [vmem:[#allocation5] sm:$0xff] }
  0x14   :  { %140 = vmatpush.bf16.msra.mxu0 %v453_v4  ;;  %v468_v29 = vld [vmem:[#allocation5 + $0x18] sm:$0xff] }
  0x15   :  { %225 = vmatpush.bf16.msra.mxu1 %v461_v5  ;;  %v488_v34 = vld [vmem:[%s635_s4] ss:$0 sm:$0xff] }
  0x16   :  { %v489_v43 = vld [vmem:[%s637_s6] ss:$0 sm:$0xff] }
  0x17   :  { %320 = vmatpush.bf16.msra.mxu2 %v471_v18 }
  0x18   :  { %141 = vmatpush.bf16.msra.mxu0 %v452_v6 }
  0x19   :  { %226 = vmatpush.bf16.msra.mxu1 %v460_v7 }
  0x1b   :  { %321 = vmatpush.bf16.msra.mxu2 %v470_v27 }
  0x1c   :  { %142 = vmatpush.bf16.msra.mxu0 %v451_v8 }
  0x1d   :  { %227 = vmatpush.bf16.msra.mxu1 %v459_v13 }
  0x1f   :  { %322 = vmatpush.bf16.msra.mxu2 %v469_v28 }
  0x20   :  { %143 = vmatpush.bf16.msra.mxu0 %v450_v9 }
  0x21   :  { %228 = vmatpush.bf16.msra.mxu1 %v458_v14 }
  0x23   :  { %323 = vmatpush.bf16.msra.mxu2 %v468_v29 }
  0x24   :  { %144 = vmatpush.bf16.msra.mxu0 %v449_v10 }
  0x25   :  { %229 = vmatpush.bf16.msra.mxu1 %v457_v15 }
  0x27   :  { %324 = vmatpush.bf16.msra.mxu2 %v467_v30 }
  0x28   :  { %145 = vmatpush.bf16.msra.mxu0 %v448_v11 }
  0x29   :  { %230 = vmatpush.bf16.msra.mxu1 %v456_v16 }
  0x2b   :  { %146 = vmatmul.bf16.vlgmr.msra.gmra.mxu0 %v447_v12  ;;  %325 = vmatpush.bf16.msra.mxu2 %v466_v31 }
  0x2f   :  { %326 = vmatpush.bf16.msra.mxu2 %v465_v32 }
  0xa8   :  { %v147_v19 = vpop.f32.mrf.mxu0 }
  0xa9   :  { %v148_v21 = vadd.f32 %v487_v20, %v147_v19 }
  0xab   :  { %v152_v24 = vmax.f32 %v148_v21, 0.0 }
  0xb0   :  { %v149_v22 = vpop.f32.mrf.mxu0 }
  0xb1   :  { %v150_v23 = vadd.f32 %v487_v20, %v149_v22 }
  0xb3   :  { %v153_v25 = vmax.f32 %v150_v23, 0.0 }
  0xb5   :  { %v154_v26 = vpack.c.bf16 %v153_v25, %v152_v24 }
  0xb7   :  { %231 = vmatmul.bf16.vlgmr.msra.gmra.mxu1 %v154_v26 }
 0x134   :  { %v232_v33 = vpop.f32.mrf.mxu1 }
 0x135   :  { %v233_v35 = vadd.f32 %v488_v34, %v232_v33 }
 0x137   :  { %v237_v38 = vmax.f32 %v233_v35, 0.0 }
 0x13c   :  { %v234_v36 = vpop.f32.mrf.mxu1 }
 0x13d   :  { %v235_v37 = vadd.f32 %v488_v34, %v234_v36 }
 0x13f   :  { %v238_v39 = vmax.f32 %v235_v37, 0.0 }
 0x141   :  { %v476_v40 = vpack.c.bf16 %v238_v39, %v237_v38 }
 0x143   :  { %477 = vst [vmem:[#allocation2] sm:$0xff] %v476_v40  }
 0x14a   :  { %v464_v41 = vld [vmem:[#allocation2] sm:$0xff] }
 0x14b   :  { %327 = vmatmul.bf16.vlgmr.msra.gmra.mxu2 %v464_v41 }
 0x1ce   :  { %v328_v42 = vpop.f32.mrf.mxu2 }
 0x1cf   :  { %v329_v45 = vadd.f32 %v489_v43, %v328_v42 }
 0x1d6   :  { %v330_v44 = vpop.f32.mrf.mxu2 }
 0x1d7   :  { %v331_v46 = vadd.f32 %v489_v43, %v330_v44 }
 0x1d9   :  { %v481_v47 = vpack.c.bf16 %v331_v46, %v329_v45 }
 0x1db   :  { %482 = vst [vmem:[%s638_s7] sm:$0xff] %v481_v47  }
 0x1dc   :  { %341 = vsyncpa [#allocation4], 1 }
 0x1dd   :  { %342 = vsyncpa [#allocation6], 1 }

</bundles_post_ra>
